<compile_context>
chip_gen: v5e
topology: v5e:2x2
jax: 0.10.0
libtpu: 0.0.40
codegen_flags: <defaults>
</compile_context>

<pallas_src>
import math
from functools import partial

import jax
import jax.numpy as jnp
from jax.experimental import pallas as pl
from jax.experimental.pallas import tpu as pltpu


def _round_up(x, m):
    return ((x + m - 1) // m) * m


def bert_self_output_kernel(
    x_ref,      # (tile_rows, C)  hidden_states slab
    res_ref,    # (tile_rows, C)  input_tensor (residual) slab
    w_ref,      # (C, C)          dense weight, bf16, layout (in, out)
    b_ref,      # (1, C)          dense bias, f32
    g_ref,      # (1, C)          LayerNorm gamma, f32
    beta_ref,   # (1, C)          LayerNorm beta, f32
    o_ref,      # (tile_rows, C)
    *, eps: float,
):
    # Dense: bf16 operands on the MXU, f32 accumulate.
    x_bf16 = x_ref[...].astype(jnp.bfloat16)
    y = jnp.dot(x_bf16, w_ref[...], preferred_element_type=jnp.float32)

    # Bias + residual (dropout is identity in eval mode).
    # TODO(synk): train-mode dropout (pltpu.prng_seed / stateful_bernoulli) not implemented.
    z = y + b_ref[0].astype(jnp.float32) + res_ref[...].astype(jnp.float32)

    # LayerNorm over the channel axis (f32; rsqrt goes to the EUP).
    mean = jnp.mean(z, axis=-1, keepdims=True)
    centered = z - mean
    var = jnp.mean(centered * centered, axis=-1, keepdims=True)
    out = centered * jax.lax.rsqrt(var + eps) * g_ref[0] + beta_ref[0]

    o_ref[...] = out.astype(o_ref.dtype)


def bert_self_output(hidden_states, input_tensor, params, *, eps=1e-12, tile_rows=512):
    """hidden_states / input_tensor: (B, N, C) f32 or bf16.  Returns (B, N, C)."""
    B, N, C = hidden_states.shape
    rows = B * N
    out_dtype = hidden_states.dtype
    act_bytes = jnp.dtype(out_dtype).itemsize

    x2 = hidden_states.reshape(rows, C)
    r2 = input_tensor.reshape(rows, C)

    # Row tile: multiple of 8 (sublane), capped by the problem size, and split
    # so the 'parallel' grid axis has >= 2 steps when possible (v7x: 2 TCs).
    tn = _round_up(max(8, min(tile_rows, _round_up(rows, 8))), 8)
    if rows > 8 and pl.cdiv(rows, tn) < 2:
        tn = _round_up(pl.cdiv(rows, 2), 8)
    grid = (pl.cdiv(rows, tn),)

    # Weight stored bf16 at init; cast here only if the caller passed f32.
    w = params["dense_w"]
    if w.dtype != jnp.bfloat16:
        w = w.astype(jnp.bfloat16)
    b = params["dense_b"].astype(jnp.float32)
    g = params["ln_w"].astype(jnp.float32)
    beta = params["ln_b"].astype(jnp.float32)

    def build(single_buffer_consts):
        def tile_spec():
            return pl.BlockSpec((tn, C), lambda i: (i, 0))

        if single_buffer_consts:
            def const_spec(shape):
                return pl.BlockSpec(shape, lambda i: (0,) * len(shape),
                                    pipeline_mode=pl.Buffered(1))
            w_bufs = 1
        else:
            def const_spec(shape):
                return pl.BlockSpec(shape, lambda i: (0,) * len(shape))
            w_bufs = 2

        # VMEM budget: double-buffered x/res/out slabs + weight + small vectors.
        vmem_bytes = (
            3 * 2 * tn * C * act_bytes      # x, res, out slabs (double-buffered)
            + w_bufs * C * C * 2            # bf16 weight
            + w_bufs * 3 * C * 4            # bias / gamma / beta
            + (2 << 20)                     # margin for compiler scratch
        )
        # 48 MiB is valid on every generation (v7x has only 64 MiB per TC).
        vmem_bytes = int(min(vmem_bytes, 48 * 1024 * 1024))

        return pl.pallas_call(
            partial(bert_self_output_kernel, eps=eps),
            out_shape=jax.ShapeDtypeStruct((rows, C), out_dtype),
            grid_spec=pltpu.PrefetchScalarGridSpec(
                num_scalar_prefetch=0,
                grid=grid,
                in_specs=[
                    tile_spec(),                 # hidden_states slab
                    tile_spec(),                 # input_tensor slab
                    const_spec((C, C)),          # dense weight
                    const_spec((1, C)),          # dense bias
                    const_spec((1, C)),          # LN gamma
                    const_spec((1, C)),          # LN beta
                ],
                out_specs=tile_spec(),
            ),
            compiler_params=pltpu.CompilerParams(
                dimension_semantics=("parallel",),
                vmem_limit_bytes=vmem_bytes,
            ),
        )

    try:
        out2 = build(True)(x2, r2, w, b, g, beta)
    except Exception:
        # Installed JAX may not accept pipeline_mode on this pallas_call path;
        # fall back to default double-buffered specs (previously validated).
        out2 = build(False)(x2, r2, w, b, g, beta)

    return out2.reshape(B, N, C)


def init_params(key, hidden_size):
    k0, k1 = jax.random.split(key)
    std = 0.02
    return {
        # (in, out) layout == torch_weight.T; stored bf16 once (hoisted cast).
        "dense_w": (std * jax.random.normal(k0, (hidden_size, hidden_size),
                                            jnp.float32)).astype(jnp.bfloat16),
        "dense_b": std * jax.random.normal(k1, (1, hidden_size), jnp.float32),
        "ln_w": jnp.ones((1, hidden_size), jnp.float32),
        "ln_b": jnp.zeros((1, hidden_size), jnp.float32),
    }


def bert_self_output_ref(hidden_states, input_tensor, params, eps=1e-12):
    """Pure-JAX f32 reference mirroring the PyTorch module (dropout = 0)."""
    w = params["dense_w"].astype(jnp.float32)
    y = hidden_states.astype(jnp.float32) @ w + params["dense_b"][0]
    z = y + input_tensor.astype(jnp.float32)
    mean = jnp.mean(z, axis=-1, keepdims=True)
    var = jnp.mean((z - mean) ** 2, axis=-1, keepdims=True)
    return (z - mean) / jnp.sqrt(var + eps) * params["ln_w"][0] + params["ln_b"][0]


if __name__ == "__main__":
    # N=9 makes rows (=18) not divisible by the row tile, exercising the
    # ragged last block (no wrapper-side padding / trimming anymore).
    B, N, C = 2, 9, 128   # hidden_size lane-aligned (multiple of 128)
    EPS = 1e-12

    key = jax.random.PRNGKey(0)
    kh, ki, kp = jax.random.split(key, 3)
    hidden_states = jax.random.normal(kh, (B, N, C), jnp.float32)
    input_tensor = jax.random.normal(ki, (B, N, C), jnp.float32)
    params = init_params(kp, C)

    out = bert_self_output(hidden_states, input_tensor, params, eps=EPS)
    out = jax.block_until_ready(out)

    ref = bert_self_output_ref(hidden_states, input_tensor, params, eps=EPS)
    assert out.shape == (B, N, C)
    # bf16 matmul operands (f32 accumulate) -> loose-ish tolerance vs f32 ref.
    assert jnp.allclose(out, ref, atol=1e-2, rtol=1e-2), "mismatch vs reference"

    print("KERNEL_OK")
</pallas_src>

<mosaic_0001>
module attributes {stable_mosaic.version = 11 : i64} {
  func.func @bert_self_output_kernel(%arg0: i32, %arg1: memref<16x128xf32, #tpu.memory_space<vmem>>, %arg2: memref<16x128xf32, #tpu.memory_space<vmem>>, %arg3: memref<128x128xbf16, #tpu.memory_space<vmem>>, %arg4: memref<1x128xf32, #tpu.memory_space<vmem>>, %arg5: memref<1x128xf32, #tpu.memory_space<vmem>>, %arg6: memref<1x128xf32, #tpu.memory_space<vmem>>, %arg7: memref<16x128xf32, #tpu.memory_space<vmem>>) attributes {dimension_semantics = [#tpu.dimension_semantics<parallel>], iteration_bounds = array<i64: 2>, scalar_prefetch = 0 : i64, scratch_operands = 0 : i64, tpu.core_type = #tpu.core_type<tc>, window_params = [{transform_indices = @transform_0, window_bounds = array<i64: 16, 128>}, {transform_indices = @transform_1, window_bounds = array<i64: 16, 128>}, {pipeline_mode = #tpu.pipeline_mode<synchronous>, transform_indices = @transform_2, window_bounds = array<i64: 128, 128>}, {pipeline_mode = #tpu.pipeline_mode<synchronous>, transform_indices = @transform_3, window_bounds = array<i64: 1, 128>}, {pipeline_mode = #tpu.pipeline_mode<synchronous>, transform_indices = @transform_4, window_bounds = array<i64: 1, 128>}, {pipeline_mode = #tpu.pipeline_mode<synchronous>, transform_indices = @transform_5, window_bounds = array<i64: 1, 128>}, {transform_indices = @transform_6, window_bounds = array<i64: 16, 128>}]} {
    %c0 = arith.constant 0 : index
    %c0_0 = arith.constant 0 : index
    %0 = vector.load %arg1[%c0, %c0_0] : memref<16x128xf32, #tpu.memory_space<vmem>>, vector<16x128xf32>
    %1 = arith.truncf %0 : vector<16x128xf32> to vector<16x128xbf16>
    %c0_1 = arith.constant 0 : index
    %c0_2 = arith.constant 0 : index
    %2 = vector.load %arg3[%c0_1, %c0_2] : memref<128x128xbf16, #tpu.memory_space<vmem>>, vector<128x128xbf16>
    %cst = arith.constant dense<0.000000e+00> : vector<16x128xf32>
    %3 = tpu.matmul %1, %2, %cst {dimension_numbers = #tpu.dot_dimension_numbers<[1], [0], [0], [1], [0, 0, 1, 1], [], []>} : vector<16x128xbf16>, vector<128x128xbf16>, vector<16x128xf32> -> vector<16x128xf32>
    %c0_3 = arith.constant 0 : index
    %c0_4 = arith.constant 0 : index
    %4 = vector.load %arg4[%c0_3, %c0_4] : memref<1x128xf32, #tpu.memory_space<vmem>>, vector<1x128xf32>
    %5 = vector.shape_cast %4 : vector<1x128xf32> to vector<128xf32>
    %6 = vector.shape_cast %5 : vector<128xf32> to vector<1x128xf32>
    %7 = vector.broadcast %6 : vector<1x128xf32> to vector<16x128xf32>
    %8 = arith.addf %3, %7 : vector<16x128xf32>
    %c0_5 = arith.constant 0 : index
    %c0_6 = arith.constant 0 : index
    %9 = vector.load %arg2[%c0_5, %c0_6] : memref<16x128xf32, #tpu.memory_space<vmem>>, vector<16x128xf32>
    %10 = arith.addf %8, %9 : vector<16x128xf32>
    %cst_7 = arith.constant dense<0.000000e+00> : vector<16xf32>
    %11 = vector.multi_reduction <add>, %10, %cst_7 [1] : vector<16x128xf32> to vector<16xf32>
    %12 = vector.shape_cast %11 : vector<16xf32> to vector<16x1xf32>
    %cst_8 = arith.constant 1.280000e+02 : f32
    %13 = vector.broadcast %cst_8 : f32 to vector<16x1xf32>
    %14 = arith.divf %12, %13 : vector<16x1xf32>
    %15 = vector.broadcast %14 : vector<16x1xf32> to vector<16x128xf32>
    %16 = arith.subf %10, %15 : vector<16x128xf32>
    %17 = arith.mulf %16, %16 : vector<16x128xf32>
    %cst_9 = arith.constant dense<0.000000e+00> : vector<16xf32>
    %18 = vector.multi_reduction <add>, %17, %cst_9 [1] : vector<16x128xf32> to vector<16xf32>
    %19 = vector.shape_cast %18 : vector<16xf32> to vector<16x1xf32>
    %cst_10 = arith.constant 1.280000e+02 : f32
    %20 = vector.broadcast %cst_10 : f32 to vector<16x1xf32>
    %21 = arith.divf %19, %20 : vector<16x1xf32>
    %cst_11 = arith.constant 9.99999996E-13 : f32
    %22 = vector.broadcast %cst_11 : f32 to vector<16x1xf32>
    %23 = arith.addf %21, %22 : vector<16x1xf32>
    %24 = math.rsqrt %23 : vector<16x1xf32>
    %25 = vector.broadcast %24 : vector<16x1xf32> to vector<16x128xf32>
    %26 = arith.mulf %16, %25 : vector<16x128xf32>
    %c0_12 = arith.constant 0 : index
    %c0_13 = arith.constant 0 : index
    %27 = vector.load %arg5[%c0_12, %c0_13] : memref<1x128xf32, #tpu.memory_space<vmem>>, vector<1x128xf32>
    %28 = vector.shape_cast %27 : vector<1x128xf32> to vector<128xf32>
    %29 = vector.shape_cast %28 : vector<128xf32> to vector<1x128xf32>
    %30 = vector.broadcast %29 : vector<1x128xf32> to vector<16x128xf32>
    %31 = arith.mulf %26, %30 : vector<16x128xf32>
    %c0_14 = arith.constant 0 : index
    %c0_15 = arith.constant 0 : index
    %32 = vector.load %arg6[%c0_14, %c0_15] : memref<1x128xf32, #tpu.memory_space<vmem>>, vector<1x128xf32>
    %33 = vector.shape_cast %32 : vector<1x128xf32> to vector<128xf32>
    %34 = vector.shape_cast %33 : vector<128xf32> to vector<1x128xf32>
    %35 = vector.broadcast %34 : vector<1x128xf32> to vector<16x128xf32>
    %36 = arith.addf %31, %35 : vector<16x128xf32>
    %c0_16 = arith.constant 0 : index
    %c0_17 = arith.constant 0 : index
    %37 = vector.load %arg7[%c0_16, %c0_17] : memref<16x128xf32, #tpu.memory_space<vmem>>, vector<16x128xf32>
    tpu.vector_store %arg7[%c0_16, %c0_17], %36 {strides = array<i32>} : memref<16x128xf32, #tpu.memory_space<vmem>>, vector<16x128xf32>,
    return
  }
  func.func @transform_0(%arg0: i32) -> (i32, i32) {
    %c0_i32 = arith.constant 0 : i32
    %c0_i32_0 = arith.constant 0 : i32
    return %arg0, %c0_i32 : i32, i32
  }
  func.func @transform_1(%arg0: i32) -> (i32, i32) {
    %c0_i32 = arith.constant 0 : i32
    %c0_i32_0 = arith.constant 0 : i32
    return %arg0, %c0_i32 : i32, i32
  }
  func.func @transform_2(%arg0: i32) -> (i32, i32) {
    %c0_i32 = arith.constant 0 : i32
    %c0_i32_0 = arith.constant 0 : i32
    %c0_i32_1 = arith.constant 0 : i32
    return %c0_i32, %c0_i32_0 : i32, i32
  }
  func.func @transform_3(%arg0: i32) -> (i32, i32) {
    %c0_i32 = arith.constant 0 : i32
    %c0_i32_0 = arith.constant 0 : i32
    %c0_i32_1 = arith.constant 0 : i32
    return %c0_i32, %c0_i32_0 : i32, i32
  }
  func.func @transform_4(%arg0: i32) -> (i32, i32) {
    %c0_i32 = arith.constant 0 : i32
    %c0_i32_0 = arith.constant 0 : i32
    %c0_i32_1 = arith.constant 0 : i32
    return %c0_i32, %c0_i32_0 : i32, i32
  }
  func.func @transform_5(%arg0: i32) -> (i32, i32) {
    %c0_i32 = arith.constant 0 : i32
    %c0_i32_0 = arith.constant 0 : i32
    %c0_i32_1 = arith.constant 0 : i32
    return %c0_i32, %c0_i32_0 : i32, i32
  }
  func.func @transform_6(%arg0: i32) -> (i32, i32) {
    %c0_i32 = arith.constant 0 : i32
    %c0_i32_0 = arith.constant 0 : i32
    return %arg0, %c0_i32 : i32, i32
  }
}

module attributes {stable_mosaic.version = 11 : i64} {
  func.func @bert_self_output_kernel(%arg0: i32, %arg1: memref<16x128xf32, #tpu.memory_space<vmem>>, %arg2: memref<16x128xf32, #tpu.memory_space<vmem>>, %arg3: memref<128x128xbf16, #tpu.memory_space<vmem>>, %arg4: memref<1x128xf32, #tpu.memory_space<vmem>>, %arg5: memref<1x128xf32, #tpu.memory_space<vmem>>, %arg6: memref<1x128xf32, #tpu.memory_space<vmem>>, %arg7: memref<16x128xf32, #tpu.memory_space<vmem>>) attributes {dimension_semantics = [#tpu.dimension_semantics<parallel>], iteration_bounds = array<i64: 2>, scalar_prefetch = 0 : i64, scratch_operands = 0 : i64, tpu.core_type = #tpu.core_type<tc>, window_params = [{transform_indices = @transform_0, window_bounds = array<i64: 16, 128>}, {transform_indices = @transform_1, window_bounds = array<i64: 16, 128>}, {pipeline_mode = #tpu.pipeline_mode<synchronous>, transform_indices = @transform_2, window_bounds = array<i64: 128, 128>}, {pipeline_mode = #tpu.pipeline_mode<synchronous>, transform_indices = @transform_3, window_bounds = array<i64: 1, 128>}, {pipeline_mode = #tpu.pipeline_mode<synchronous>, transform_indices = @transform_4, window_bounds = array<i64: 1, 128>}, {pipeline_mode = #tpu.pipeline_mode<synchronous>, transform_indices = @transform_5, window_bounds = array<i64: 1, 128>}, {transform_indices = @transform_6, window_bounds = array<i64: 16, 128>}]} {
    %c0 = arith.constant 0 : index
    %c0_0 = arith.constant 0 : index
    %0 = vector.load %arg1[%c0, %c0_0] : memref<16x128xf32, #tpu.memory_space<vmem>>, vector<16x128xf32>
    %1 = arith.truncf %0 : vector<16x128xf32> to vector<16x128xbf16>
    %c0_1 = arith.constant 0 : index
    %c0_2 = arith.constant 0 : index
    %2 = vector.load %arg3[%c0_1, %c0_2] : memref<128x128xbf16, #tpu.memory_space<vmem>>, vector<128x128xbf16>
    %cst = arith.constant dense<0.000000e+00> : vector<16x128xf32>
    %3 = tpu.matmul %1, %2, %cst {dimension_numbers = #tpu.dot_dimension_numbers<[1], [0], [0], [1], [0, 0, 1, 1], [], []>} : vector<16x128xbf16>, vector<128x128xbf16>, vector<16x128xf32> -> vector<16x128xf32>
    %c0_3 = arith.constant 0 : index
    %c0_4 = arith.constant 0 : index
    %4 = vector.load %arg4[%c0_3, %c0_4] : memref<1x128xf32, #tpu.memory_space<vmem>>, vector<1x128xf32>
    %5 = vector.shape_cast %4 : vector<1x128xf32> to vector<128xf32>
    %6 = vector.shape_cast %5 : vector<128xf32> to vector<1x128xf32>
    %7 = vector.broadcast %6 : vector<1x128xf32> to vector<16x128xf32>
    %8 = arith.addf %3, %7 : vector<16x128xf32>
    %c0_5 = arith.constant 0 : index
    %c0_6 = arith.constant 0 : index
    %9 = vector.load %arg2[%c0_5, %c0_6] : memref<16x128xf32, #tpu.memory_space<vmem>>, vector<16x128xf32>
    %10 = arith.addf %8, %9 : vector<16x128xf32>
    %cst_7 = arith.constant dense<0.000000e+00> : vector<16xf32>
    %11 = vector.multi_reduction <add>, %10, %cst_7 [1] : vector<16x128xf32> to vector<16xf32>
    %12 = vector.shape_cast %11 : vector<16xf32> to vector<16x1xf32>
    %cst_8 = arith.constant 1.280000e+02 : f32
    %13 = vector.broadcast %cst_8 : f32 to vector<16x1xf32>
    %14 = arith.divf %12, %13 : vector<16x1xf32>
    %15 = vector.broadcast %14 : vector<16x1xf32> to vector<16x128xf32>
    %16 = arith.subf %10, %15 : vector<16x128xf32>
    %17 = arith.mulf %16, %16 : vector<16x128xf32>
    %cst_9 = arith.constant dense<0.000000e+00> : vector<16xf32>
    %18 = vector.multi_reduction <add>, %17, %cst_9 [1] : vector<16x128xf32> to vector<16xf32>
    %19 = vector.shape_cast %18 : vector<16xf32> to vector<16x1xf32>
    %cst_10 = arith.constant 1.280000e+02 : f32
    %20 = vector.broadcast %cst_10 : f32 to vector<16x1xf32>
    %21 = arith.divf %19, %20 : vector<16x1xf32>
    %cst_11 = arith.constant 9.99999996E-13 : f32
    %22 = vector.broadcast %cst_11 : f32 to vector<16x1xf32>
    %23 = arith.addf %21, %22 : vector<16x1xf32>
    %24 = math.rsqrt %23 : vector<16x1xf32>
    %25 = vector.broadcast %24 : vector<16x1xf32> to vector<16x128xf32>
    %26 = arith.mulf %16, %25 : vector<16x128xf32>
    %c0_12 = arith.constant 0 : index
    %c0_13 = arith.constant 0 : index
    %27 = vector.load %arg5[%c0_12, %c0_13] : memref<1x128xf32, #tpu.memory_space<vmem>>, vector<1x128xf32>
    %28 = vector.shape_cast %27 : vector<1x128xf32> to vector<128xf32>
    %29 = vector.shape_cast %28 : vector<128xf32> to vector<1x128xf32>
    %30 = vector.broadcast %29 : vector<1x128xf32> to vector<16x128xf32>
    %31 = arith.mulf %26, %30 : vector<16x128xf32>
    %c0_14 = arith.constant 0 : index
    %c0_15 = arith.constant 0 : index
    %32 = vector.load %arg6[%c0_14, %c0_15] : memref<1x128xf32, #tpu.memory_space<vmem>>, vector<1x128xf32>
    %33 = vector.shape_cast %32 : vector<1x128xf32> to vector<128xf32>
    %34 = vector.shape_cast %33 : vector<128xf32> to vector<1x128xf32>
    %35 = vector.broadcast %34 : vector<1x128xf32> to vector<16x128xf32>
    %36 = arith.addf %31, %35 : vector<16x128xf32>
    %c0_16 = arith.constant 0 : index
    %c0_17 = arith.constant 0 : index
    %37 = vector.load %arg7[%c0_16, %c0_17] : memref<16x128xf32, #tpu.memory_space<vmem>>, vector<16x128xf32>
    tpu.vector_store %arg7[%c0_16, %c0_17], %36 {strides = array<i32>} : memref<16x128xf32, #tpu.memory_space<vmem>>, vector<16x128xf32>,
    return
  }
  func.func @transform_0(%arg0: i32) -> (i32, i32) {
    %c0_i32 = arith.constant 0 : i32
    %c0_i32_0 = arith.constant 0 : i32
    return %arg0, %c0_i32 : i32, i32
  }
  func.func @transform_1(%arg0: i32) -> (i32, i32) {
    %c0_i32 = arith.constant 0 : i32
    %c0_i32_0 = arith.constant 0 : i32
    return %arg0, %c0_i32 : i32, i32
  }
  func.func @transform_2(%arg0: i32) -> (i32, i32) {
    %c0_i32 = arith.constant 0 : i32
    %c0_i32_0 = arith.constant 0 : i32
    %c0_i32_1 = arith.constant 0 : i32
    return %c0_i32, %c0_i32_0 : i32, i32
  }
  func.func @transform_3(%arg0: i32) -> (i32, i32) {
    %c0_i32 = arith.constant 0 : i32
    %c0_i32_0 = arith.constant 0 : i32
    %c0_i32_1 = arith.constant 0 : i32
    return %c0_i32, %c0_i32_0 : i32, i32
  }
  func.func @transform_4(%arg0: i32) -> (i32, i32) {
    %c0_i32 = arith.constant 0 : i32
    %c0_i32_0 = arith.constant 0 : i32
    %c0_i32_1 = arith.constant 0 : i32
    return %c0_i32, %c0_i32_0 : i32, i32
  }
  func.func @transform_5(%arg0: i32) -> (i32, i32) {
    %c0_i32 = arith.constant 0 : i32
    %c0_i32_0 = arith.constant 0 : i32
    %c0_i32_1 = arith.constant 0 : i32
    return %c0_i32, %c0_i32_0 : i32, i32
  }
  func.func @transform_6(%arg0: i32) -> (i32, i32) {
    %c0_i32 = arith.constant 0 : i32
    %c0_i32_0 = arith.constant 0 : i32
    return %arg0, %c0_i32 : i32, i32
  }
}

</mosaic_0001>

<bundles_post_ra>
// kernel: tpu_custom_call.1
= control target key start
LH: loop header
LB: loop body
LE: loop exit
PB: predicated region body
PF: predicated region fallthrough
CT: control target
= control target key end

     0   :  { %s1293_s0 = inlined_call_operand.hbm [shape: f32[18,128], index: 0, kind: input, shape index: {}]   ;;  %s1294_s1 = inlined_call_operand.hbm [shape: f32[18,128], index: 1, kind: input, shape index: {}]   ;;  %s1295_s2 = inlined_call_operand.hbm [shape: bf16[128,128], index: 2, kind: input, shape index: {}]   ;;  %s1296_s3 = inlined_call_operand.vmem [shape: f32[1,128], index: 3, kind: input, shape index: {}]   ;;  %s1297_s4 = inlined_call_operand.vmem [shape: f32[1,128], index: 4, kind: input, shape index: {}]   ;;  %s1298_s5 = inlined_call_operand.vmem [shape: f32[1,128], index: 5, kind: input, shape index: {}]   ;;  %s1299_s6 = inlined_call_operand.hbm [shape: f32[18,128], index: 6, kind: output, shape index: {}]  }
   0x1   :  { %1305 = sst [smem:[#allocation15_spill]] %s1295_s2 }
   0x2   :  { %11 = vsyncpa [#allocation3], 0 }
   0x3   :  { %13 = vsyncpa [#allocation3 + $0x1], 0 }
   0x4   :  { %14 = vsyncpa [#allocation6], 0 }
   0x5   :  { %16 = vsyncpa [#allocation6 + $0x1], 0 }
   0x6   :  { %17 = vsyncpa [#allocation4], 0 }
   0x7   :  { %19 = vsyncpa [#allocation4 + $0x1], 0  ;;  %s1024_s21 = smov 0   ;;  %s1026_s22 = smov 0  }
   0x8   :  { %s1028_s23 = smov 0   ;;  %s1030_s24 = smov 0  }
   0x9 LB: > { %s1045_s25 = sadd.s32 4294967295, %s974_s24   ;;  %s637_s26 = sadd.s32 4294967294, %s974_s24   ;;  %s974_s24 = sphi %s1030_s24, %s1323_s24   ;;  %s970_s23 = sphi %s1028_s23, %s1327_s23   ;;  %s966_s22 = sphi %s1026_s22, %s1326_s22   ;;  %s962_s21 = sphi %s1024_s21, %s1325_s21  }
   0xa   : > { %s1049_s27 = sadd.s32 1, %s974_s24   ;;  %s32_s28 = sadd.s32 1, %s970_s23 }
   0xb   : > { %1306 = sst [smem:[#allocation13_spill]] %s1049_s27  ;;  %s29_s29 = ssub.s32 %s974_s24, %s1049_s27 }
   0xc   : > { %p39_p0 = scmp.ne.s32.totalorder %s970_s23, %s966_s22  ;;  %p30_p1 = scmp.eq.s32.totalorder %s29_s29, 0 }
   0xd   : > { %p40_p2 = scmp.eq.s32.totalorder %s974_s24, 0  ;;  %p45_p3 = scmp.ne.s32.totalorder %s966_s22, %s962_s21 }
   0xe   : > { %p1304_p4 = scmp.eq.s32.totalorder %s1045_s25, 0  ;;  %p179_p7 = scmp.eq.s32.totalorder %s1045_s25, 1 }
   0xf   : > { %s1061_s30 = scalar_select %p30_p1, %s970_s23, %s32_s28  }
  0x10   : > { %p1063_p5 = por %p40_p2, %p39_p0  ;;  %p1069_p6 = por %p1304_p4, %p45_p3 }
  0x11   : > { %1307 = sst [smem:[#allocation14_spill]] %s1061_s30  ;;  %p185_p8 = scmp.eq.s32.totalorder %s637_s26, 1 }
  0x12   : > { %p638_p9 = scmp.ge.s32.totalorder %s974_s24, 1  ;;  %p192_p10 = scmp.lt.s32.totalorder %s974_s24, 3 }
  0x13   : > { %p1076_p11 = por %p179_p7, %p39_p0  ;;  %p1080_p12 = por %p185_p8, %p45_p3 }
  0x14   : > { %p1084_p13 = pnand %p638_p9, %p192_p10  ;;  %s1313_s2 = sld [smem:[#allocation15_spill]] }
  0x15   : > { %s1310_s9 = scalar_select %p1076_p11, 1, 0 }
  0x16   : > { %s1311_s10 = scalar_select %p1080_p12, 1, 0 }
  0x17   : > { %p719_p1 = pneg %p1084_p13  ;;  %s976_s15 = smov [#allocation7]  }
  0x18   : > { %s205_s16 = sshll.u32 %s976_s15, 4  ;;  %s977_s17 = smov 64   ;;  %s206_s16 = int_to_ptr.vmem [resolvable:$true] %s205_s16 }
  0x19   : > { %p720_p0 = pnand %p719_p1, %p1304_p4  ;;  %s978_s18 = smov 4  }
  0x1a   : > { %s203_s14 = sshll.u32 %s1313_s2, 4  ;;  %p1300_p2 = scmp.ge.s32.totalorder %s974_s24, 2  ;;  %s204_s14 = int_to_ptr.hbm [resolvable:$true] %s203_s14 }
  0x1b   : > { %722 = dma.hbm_to_vmem [thread:$0]  (!%p720_p0), %s204_s14, 1024, %s206_s16, [#allocation6], %s977_s17, %s977_s17, %s978_s18  }
  0x1c   : > { %224 = sbr.rel (%p1300_p2) target bundleno = 106 (0x6a), region = 32 }
  0x21   : > { %227 = sbr.rel (!%p1063_p5) target bundleno = 70 (0x46), region = 36  ;;  %s228_s19 = sand.u32 (%p1063_p5), 1, %s970_s23  }
  0x22   : > { %s642_s20 = sshll.u32 (%p1063_p5), %s974_s24, 1  ;;  %s641_s26 = sshll.u32 (%p1063_p5), %s228_s19, 4 }
  0x23   : > { %s234_s28 = ssub.s32 (%p1063_p5), 3, %s642_s20  ;;  %s1105_s14 = scalar_lea.sflag (%p1063_p5), [#allocation3], %s228_s19 }
  0x24   : > { %p235_p3 = scmp.lt.s32.totalorder (%p1063_p5), %s234_s28, 2  ;;  %s232_s15 = scalar_lea.vmem (%p1063_p5), [#allocation2], %s641_s26 }
  0x26   : > { %s1329_s28 = smov (!%p235_p3, %s234_s28), 2 }
  0x27   : > { %s643_s29 = sshll.u32 %s1329_s28, 3 }
  0x28   : > { %s238_s12 = ssub.s32 16, %s643_s29 }
  0x29   : > { %s239_s13 = sshll.u32 %s238_s12, 4 }
  0x2a   : > { %240 = vsyncadd %s1105_s14, %s239_s13  ;;  %p1108_p7 = scmp.ne.s32.totalorder %s643_s29, 0  ;;  %s701_s17 = sshll.u32 %s974_s24, 4 }
  0x2b   : > { %s243_s2 = scalar_lea.hbm %s1293_s0, %s701_s17  ;;  %s1116_s30 = sshll.u32 %s232_s15, 4  ;;  %s248_s30 = int_to_ptr.vmem [resolvable:$true] %s1116_s30 }
  0x2c   : > { %s245_s19 = sshll.u32 %s243_s2, 4  ;;  %s1301_s26 = sshll.u32 %s1329_s28, 7  ;;  %s1119_s19 = int_to_ptr.hbm [resolvable:$true] %s245_s19 }
  0x2d   : > { %s811_s12 = sshra.s32 %s1119_s19, 4  ;;  %s813_s29 = sshrl.u32 %s1301_s26, 4  ;;  %s812_s12 = int_to_ptr.hbm [resolvable:$true] %s811_s12 }
  0x2e   : > { %s818_s13 = scalar_lea.hbm %s812_s12, %s813_s29  ;;  %s822_s15 = scalar_lea.hbm %s1293_s0, 24 }
  0x2f   : > { %p819_p8 = scmp.ne.s32.totalorder %s812_s12, %s818_s13  ;;  %p823_p1 = scmp.lt.s32.totalorder %s812_s12, %s1293_s0 }
  0x30   : > { %p824_p0 = scmp.lt.s32.totalorder %s822_s15, %s818_s13 }
  0x31   : > { %p820_p9 = pnand %p819_p8, %p1108_p7 }
  0x32   : > { %p825_p3 = por %p824_p0, %p823_p1 }
  0x33   : > { %p821_p10 = pneg %p820_p9 }
  0x35   : > { %p826_p2 = pnand %p825_p3, %p821_p10 }
  0x37   : > { %829 = shalt.err (!%p826_p2)
}
  0x38   : > { %s830_s26 = sshra.s32 %s248_s30, 4  ;;  %s979_s18 = smov [#allocation2]   ;;  %s831_s26 = int_to_ptr.vmem [resolvable:$true] %s830_s26 }
  0x39   : > { %s837_s27 = scalar_lea.vmem %s831_s26, %s813_s29  ;;  %s841_s17 = scalar_lea.vmem %s979_s18, 32 }
  0x3a   : > { %p838_p8 = scmp.ne.s32.totalorder %s831_s26, %s837_s27  ;;  %p843_p12 = scmp.lt.s32.totalorder %s841_s17, %s837_s27 }
  0x3c   : > { %p839_p9 = pnand %p838_p8, %p1108_p7 }
  0x3e   : > { %p840_p4 = pneg %p839_p9 }
  0x40   : > { %p845_p11 = pnand %p843_p12, %p840_p4 }
  0x42   : > { %848 = shalt.err (!%p845_p11)
}
  0x43   : > { %s980_s12 = smov 128   ;;  %s981_s13 = smov 8  }
  0x44   : > { %s1315_s15 = sshll.u32 %s1329_s28, 7 }
  0x45   : > { %253 = dma.hbm_to_vmem [thread:$0]  (%p1108_p7), %s1119_s19, %s1315_s15, %s248_s30, %s1105_s14, %s980_s12, %s980_s12, %s981_s13  }
  0x46 PF: > { %256 = sbr.rel (!%p1063_p5) target bundleno = 106 (0x6a), region = 40  ;;  %s257_s27 = sand.u32 (%p1063_p5), 1, %s974_s24  }
  0x47   : > { %s259_s26 = sand.u32 (%p1063_p5), 1, %s970_s23   ;;  %s649_s20 = sshll.u32 (%p1063_p5), %s974_s24, 1 }
  0x48   : > { %s648_s29 = sshll.u32 (%p1063_p5), %s259_s26, 4  ;;  %s263_s2 = ssub.s32 (%p1063_p5), 3, %s649_s20 }
  0x49   : > { %p264_p4 = scmp.lt.s32.totalorder (%p1063_p5), %s263_s2, 2  ;;  %s1153_s30 = scalar_lea.sflag (%p1063_p5), [#allocation6], %s257_s27 }
  0x4a   : > { %s261_s7 = scalar_lea.vmem (%p1063_p5), [#allocation5], %s648_s29 }
  0x4b   : > { %s1331_s2 = smov (!%p264_p4, %s263_s2), 2 }
  0x4c   : > { %s650_s16 = sshll.u32 %s1331_s2, 3 }
  0x4d   : > { %s267_s18 = ssub.s32 16, %s650_s16 }
  0x4e   : > { %s268_s28 = sshll.u32 %s267_s18, 4 }
  0x4f   : > { %269 = vsyncadd %s1153_s30, %s268_s28  ;;  %p1156_p5 = scmp.ne.s32.totalorder %s650_s16, 0  ;;  %s702_s19 = sshll.u32 %s974_s24, 4 }
  0x50   : > { %s272_s13 = scalar_lea.hbm %s1294_s1, %s702_s19  ;;  %s1164_s15 = sshll.u32 %s261_s7, 4  ;;  %s277_s15 = int_to_ptr.vmem [resolvable:$true] %s1164_s15 }
  0x51   : > { %s274_s27 = sshll.u32 %s272_s13, 4  ;;  %s654_s26 = sshll.u32 %s1331_s2, 7  ;;  %s1167_s27 = int_to_ptr.hbm [resolvable:$true] %s274_s27 }
  0x52   : > { %s850_s29 = sshra.s32 %s1167_s27, 4  ;;  %s852_s20 = sshrl.u32 %s654_s26, 4  ;;  %s851_s29 = int_to_ptr.hbm [resolvable:$true] %s850_s29 }
  0x53   : > { %s857_s16 = scalar_lea.hbm %s851_s29, %s852_s20  ;;  %s861_s7 = scalar_lea.hbm %s1294_s1, 24 }
  0x54   : > { %p858_p11 = scmp.ne.s32.totalorder %s851_s29, %s857_s16  ;;  %p862_p7 = scmp.lt.s32.totalorder %s851_s29, %s1294_s1 }
  0x55   : > { %p863_p10 = scmp.lt.s32.totalorder %s861_s7, %s857_s16 }
  0x56   : > { %p859_p12 = pnand %p858_p11, %p1156_p5 }
  0x57   : > { %p864_p1 = por %p863_p10, %p862_p7 }
  0x58   : > { %p860_p2 = pneg %p859_p12 }
  0x5a   : > { %p865_p0 = pnand %p864_p1, %p860_p2 }
  0x5c   : > { %868 = shalt.err (!%p865_p0)
}
  0x5d   : > { %s869_s12 = sshra.s32 %s277_s15, 4  ;;  %s982_s18 = smov [#allocation5]   ;;  %s870_s12 = int_to_ptr.vmem [resolvable:$true] %s869_s12 }
  0x5e   : > { %s876_s13 = scalar_lea.vmem %s870_s12, %s852_s20  ;;  %s880_s28 = scalar_lea.vmem %s982_s18, 32 }
  0x5f   : > { %p877_p3 = scmp.ne.s32.totalorder %s870_s12, %s876_s13  ;;  %p882_p4 = scmp.lt.s32.totalorder %s880_s28, %s876_s13 }
  0x61   : > { %p878_p8 = pnand %p877_p3, %p1156_p5 }
  0x63   : > { %p879_p9 = pneg %p878_p8 }
  0x65   : > { %p884_p11 = pnand %p882_p4, %p879_p9 }
  0x67   : > { %887 = shalt.err (!%p884_p11)
}
  0x68   : > { %s983_s29 = smov 128   ;;  %s984_s16 = smov 8  }
  0x69   : > { %282 = dma.hbm_to_vmem [thread:$0]  (%p1156_p5), %s1167_s27, %s654_s26, %s277_s15, %s1153_s30, %s983_s29, %s983_s29, %s984_s16  }
  0x6a PF: > { %288 = sbr.rel (%p1084_p13) target bundleno = 586 (0x24a), region = 44  ;;  %s1196_s20 = sand.u32 (!%p1084_p13), 1, %s966_s22  }
  0x6b   : > { %s1199_s7 = sshll.u32 (!%p1084_p13), %s1196_s20, 4  ;;  %s291_s19 = scalar_lea.sflag (!%p1084_p13), [#allocation3], %s1196_s20 }
  0x6c   : > { %s294_s17 = scalar_lea.vmem (!%p1084_p13), [#allocation2], %s1199_s7 }
  0x6f   : > { %945 = dma.done.wait (%p1069_p6), %s291_s19, 256  }
  0x70   : > { %947 = vsyncadd (%p1069_p6), %s291_s19, 4294967040  ;;  %s300_s11 = sand.u32 1, %s1045_s25   ;;  %s304_s30 = scalar_lea.vmem [#allocation5], %s1199_s7 }
  0x71   : > { %s301_s2 = scalar_lea.sflag [#allocation6], %s300_s11 }
  0x72   : > { %949 = dma.done.wait (%p1069_p6), %s301_s2, 256  }
  0x73   : > { %951 = vsyncadd (%p1069_p6), %s301_s2, 4294967040  ;;  %p1317_p13 = scmp.eq.s32.totalorder %s1045_s25, 0 }
  0x75   : > { %953 = dma.done.wait (%p1317_p13), [#allocation6], 1024   ;;  %p1318_p5 = pmov %p1317_p13 }
  0x76   : > { %v710_v0 = vld [vmem:[#allocation7 + $0x38] sm:$0xff]  ;;  %v709_v1 = vld [vmem:[#allocation7 + $0x30] sm:$0xff]  ;;  %v708_v2 = vld [vmem:[#allocation7 + $0x28] sm:$0xff]  ;;  %v985_v20 = vmov 128.0   ;;  %s343_s13 = scalar_lea.vmem [#allocation8], %s1199_s7  ;;  %s510_s18 = scalar_lea.sflag [#allocation4], %s1196_s20 }
  0x77   : > { %955 = vsyncadd (%p1318_p5), [#allocation6], 4294966272  ;;  %430 = vmatpush.bf16.msra.mxu0 %v710_v0  ;;  %v707_v3 = vld [vmem:[#allocation7 + $0x20] sm:$0xff]  ;;  %v706_v4 = vld [vmem:[#allocation7 + $0x18] sm:$0xff]  ;;  %775 = vrcp.f32 %v985_v20  ;;  %p1319_p6 = scmp.ne.s32.totalorder %s1310_s9, 0 }
  0x78   : > { %v705_v5 = vld [vmem:[#allocation7 + $0x10] sm:$0xff]  ;;  %v704_v6 = vld [vmem:[#allocation7 + $0x8] sm:$0xff]  ;;  %v703_v7 = vld [vmem:[#allocation7] sm:$0xff]  ;;  %s693_s28 = sshll.u32 (%p1319_p6), %s1045_s25, 1 }
  0x79   : > { %v359_v8 = vld [vmem:[%s294_s17] sm:$0xff]  ;;  %v360_v9 = vld [vmem:[%s294_s17 + $0x8] sm:$0xff]  ;;  %s518_s29 = ssub.s32 (%p1319_p6), 3, %s693_s28 }
  0x7a   : > { %v361_v10 = vpack.c.bf16 %v360_v9, %v359_v8  ;;  %v772_v11 = vld [vmem:[%s1296_s3] ss:$0 sm:$0xff]  ;;  %v445_v17 = vld [vmem:[%s304_s30 + $0x8] sm:$0xff]  ;;  %p519_p12 = scmp.lt.s32.totalorder (%p1319_p6), %s518_s29, 2 }
  0x7b   : > { %431 = vmatpush.bf16.msra.mxu0 %v709_v1  ;;  %v444_v13 = vld [vmem:[%s304_s30] sm:$0xff] }
  0x7c   : > { %v773_v49 = vld [vmem:[%s1297_s4] ss:$0 sm:$0xff] }
  0x7d   : > { %v776_v21 = vpop.eup %775  ;;  %v774_v52 = vld [vmem:[%s1298_s5] ss:$0 sm:$0xff] }
  0x7e   : > { %v453_v22 = vmul.f32 128.0, %v776_v21  ;;  %vm457_vm0 = vweird.f32 %v776_v21 }
  0x7f   : > { %432 = vmatpush.bf16.msra.mxu0 %v708_v2 }
  0x80   : > { %v454_v23 = vsub.f32 1.0, %v453_v22 }
  0x82   : > { %v455_v24 = vmul.f32 %v776_v21, %v454_v23 }
  0x83   : > { %433 = vmatpush.bf16.msra.mxu0 %v707_v3 }
  0x84   : > { %v456_v25 = vadd.f32 %v776_v21, %v455_v24 }
  0x86   : > { %v458_v26 = vsel %vm457_vm0, %v776_v21, %v456_v25 }
  0x87   : > { %434 = vmatpush.bf16.msra.mxu0 %v706_v4 }
  0x8b   : > { %435 = vmatpush.bf16.msra.mxu0 %v705_v5 }
  0x8f   : > { %436 = vmatpush.bf16.msra.mxu0 %v704_v6 }
  0x93   : > { %437 = vmatpush.bf16.msra.mxu0 %v703_v7 }
  0x96   : > { %438 = vmatmul.bf16.vlgmr.msra.gmra.mxu0 %v361_v10 }
 0x113   : > { %v439_v12 = vpop.f32.mrf.mxu0 }
 0x114   : > { %v440_v14 = vadd.f32 %v772_v11, %v439_v12 }
 0x116   : > { %v446_v15 = vadd.f32 %v444_v13, %v440_v14 }
 0x118   : > { %448 = vadd.xlane.f32.xlu0 %v446_v15 }
 0x11b   : > { %v441_v16 = vpop.f32.mrf.mxu0 }
 0x11c   : > { %v442_v18 = vadd.f32 %v772_v11, %v441_v16 }
 0x11e   : > { %v447_v19 = vadd.f32 %v445_v17, %v442_v18 }
 0x120   : > { %450 = vadd.xlane.f32.xlu0 %v447_v19 }
 0x18b   : > { %v449_v27 = vpop.xlane.xlu0 %448 }
 0x18c   : > { %v459_v28 = vmul.f32 %v458_v26, %v449_v27 }
 0x18e   : > { %v461_v29 = vsub.f32 %v446_v15, %v459_v28 }
 0x190   : > { %v463_v30 = vmul.f32 %v461_v29, %v461_v29 }
 0x192   : > { %465 = vadd.xlane.f32.xlu1 %v463_v30 }
 0x193   : > { %v451_v31 = vpop.xlane.xlu0 %450 }
 0x194   : > { %v460_v32 = vmul.f32 %v458_v26, %v451_v31 }
 0x196   : > { %v462_v33 = vsub.f32 %v447_v19, %v460_v32 }
 0x198   : > { %v464_v34 = vmul.f32 %v462_v33, %v462_v33 }
 0x19a   : > { %467 = vadd.xlane.f32.xlu1 %v464_v34 }
 0x205   : > { %v466_v35 = vpop.xlane.xlu1 %465 }
 0x206   : > { %v469_v36 = vmul.f32 %v466_v35, %v458_v26 }
 0x208   : > { %v471_v37 = vadd.f32 1e-12, %v469_v36 }
 0x20a   : > { %777 = vrsqrt.f32 %v471_v37  ;;  %vm479_vm2 = vweird.f32 %v471_v37 }
 0x20d   : > { %v468_v38 = vpop.xlane.xlu1 %467 }
 0x20e   : > { %v470_v39 = vmul.f32 %v468_v38, %v458_v26 }
 0x210   : > { %v778_v40 = vpop.eup %777  ;;  %v472_v41 = vadd.f32 1e-12, %v470_v39 }
 0x211   : > { %v474_v42 = vmul.f32 %v778_v40, %v471_v37  ;;  %vm480_vm1 = vweird.f32 %v778_v40 }
 0x212   : > { %779 = vrsqrt.f32 %v472_v41  ;;  %vm481_vm3 = vmor %vm479_vm2, %vm480_vm1  ;;  %vm489_vm5 = vweird.f32 %v472_v41 }
 0x213   : > { %v475_v43 = vmul.f32 %v778_v40, %v474_v42 }
 0x215   : > { %v476_v44 = vmul.f32 0.5, %v475_v43 }
 0x217   : > { %v477_v45 = vsub.f32 1.5, %v476_v44 }
 0x218   : > { %v780_v46 = vpop.eup %779 }
 0x219   : > { %v478_v47 = vmul.f32 %v778_v40, %v477_v45  ;;  %v484_v48 = vmul.f32 %v780_v46, %v472_v41  ;;  %vm490_vm4 = vweird.f32 %v780_v46 }
 0x21a   : > { %vm491_vm6 = vmor %vm489_vm5, %vm490_vm4 }
 0x21b   : > { %v482_v50 = vsel %vm481_vm3, %v778_v40, %v478_v47  ;;  %v485_v51 = vmul.f32 %v780_v46, %v484_v48 }
 0x21c   : > { %v493_v53 = vmul.f32 %v482_v50, %v461_v29 }
 0x21d   : > { %v486_v54 = vmul.f32 0.5, %v485_v51 }
 0x21e   : > { %v499_v55 = vmul.f32 %v773_v49, %v493_v53 }
 0x21f   : > { %v487_v56 = vsub.f32 1.5, %v486_v54 }
 0x220   : > { %v505_v57 = vadd.f32 %v774_v52, %v499_v55 }
 0x221   : > { %v488_v58 = vmul.f32 %v780_v46, %v487_v56 }
 0x222   : > { %507 = vst [vmem:[%s343_s13] sm:$0xff] %v505_v57 }
 0x223   : > { %v492_v59 = vsel %vm491_vm6, %v780_v46, %v488_v58 }
 0x224   : > { %v494_v60 = vmul.f32 %v492_v59, %v462_v33 }
 0x226   : > { %v500_v61 = vmul.f32 %v773_v49, %v494_v60  ;;  %516 = sbr.rel (!%p1319_p6) target bundleno = 586 (0x24a), region = 60 }
 0x228   : > { %v506_v62 = vadd.f32 %v774_v52, %v500_v61 }
 0x22a   : > { %508 = vst [vmem:[%s343_s13 + $0x8] sm:$0xff] %v506_v62 }
 0x22b   : > { %s1333_s29 = smov (!%p519_p12, %s518_s29), 2 }
 0x22c   : > { %s694_s16 = sshll.u32 %s1333_s29, 3 }
 0x22d   : > { %s522_s7 = ssub.s32 16, %s694_s16 }
 0x22e   : > { %s523_s19 = sshll.u32 %s522_s7, 4 }
 0x22f   : > { %524 = vsyncadd %s510_s18, %s523_s19  ;;  %p1240_p2 = scmp.ne.s32.totalorder %s694_s16, 0  ;;  %s711_s9 = sshll.u32 %s1045_s25, 4 }
 0x230   : > { %s527_s30 = scalar_lea.hbm %s1299_s6, %s711_s9  ;;  %s529_s8 = sshll.u32 %s343_s13, 4  ;;  %s1248_s8 = int_to_ptr.vmem [resolvable:$true] %s529_s8 }
 0x231   : > { %s531_s14 = sshll.u32 %s527_s30, 4  ;;  %s698_s15 = sshll.u32 %s1333_s29, 7  ;;  %s1250_s14 = int_to_ptr.hbm [resolvable:$true] %s531_s14 }
 0x232   : > { %s889_s27 = sshra.s32 %s1248_s8, 4  ;;  %s891_s26 = sshrl.u32 %s698_s15, 4  ;;  %s890_s27 = int_to_ptr.vmem [resolvable:$true] %s889_s27 }
 0x233   : > { %s896_s12 = scalar_lea.vmem %s890_s27, %s891_s26  ;;  %s986_s25 = smov [#allocation8]  }
 0x234   : > { %p897_p7 = scmp.ne.s32.totalorder %s890_s27, %s896_s12  ;;  %s900_s28 = scalar_lea.vmem %s986_s25, 32 }
 0x235   : > { %p902_p0 = scmp.lt.s32.totalorder %s900_s28, %s896_s12 }
 0x236   : > { %p898_p10 = pnand %p897_p7, %p1240_p2 }
 0x238   : > { %p899_p1 = pneg %p898_p10 }
 0x23a   : > { %p904_p3 = pnand %p902_p0, %p899_p1 }
 0x23c   : > { %907 = shalt.err (!%p904_p3)
}
 0x23d   : > { %s908_s13 = sshra.s32 %s1250_s14, 4  ;;  %s919_s9 = scalar_lea.hbm %s1299_s6, 24  ;;  %s909_s13 = int_to_ptr.hbm [resolvable:$true] %s908_s13 }
 0x23e   : > { %s915_s16 = scalar_lea.hbm %s909_s13, %s891_s26  ;;  %p920_p11 = scmp.lt.s32.totalorder %s909_s13, %s1299_s6 }
 0x23f   : > { %p916_p8 = scmp.ne.s32.totalorder %s909_s13, %s915_s16  ;;  %p921_p13 = scmp.lt.s32.totalorder %s919_s9, %s915_s16 }
 0x241   : > { %p917_p9 = pnand %p916_p8, %p1240_p2  ;;  %p922_p5 = por %p921_p13, %p920_p11 }
 0x243   : > { %p918_p4 = pneg %p917_p9 }
 0x245   : > { %p923_p6 = pnand %p922_p5, %p918_p4 }
 0x247   : > { %926 = shalt.err (!%p923_p6)
}
 0x248   : > { %s987_s30 = smov 128   ;;  %s988_s27 = smov 8  }
 0x249   : > { %537 = dma.vmem_to_hbm [thread:$0]  (%p1240_p2), %s1248_s8, %s698_s15, %s1250_s14, %s510_s18, %s987_s30, %s987_s30, %s988_s27  }
 0x24a PF: > { %s546_s26 = sand.u32 1, %s962_s21   ;;  %p1321_p12 = scmp.ne.s32.totalorder %s1311_s10, 0 }
 0x24b   : > { %p1322_p7 = scmp.ge.s32.totalorder %s974_s24, 2  ;;  %s547_s12 = scalar_lea.sflag [#allocation4], %s546_s26 }
 0x24d   : > { %p724_p10 = pnand %p1322_p7, %p1321_p12 }
 0x24f   : > { %p725_p1 = pneg %p724_p10 }
 0x251   : > { %957 = dma.done.wait (%p725_p1), %s547_s12, 256  }
 0x252   : > { %959 = vsyncadd (%p725_p1), %s547_s12, 4294967040  ;;  %s1323_s24 = sld [smem:[#allocation13_spill]]  ;;  %s1325_s21 = smov %s966_s22 }
 0x253   : > { %s1324_s17 = sld [smem:[#allocation14_spill]]  ;;  %s1326_s22 = smov %s970_s23 }
 0x258   : > { %p22_p0 = scmp.ge.s32.totalorder %s1323_s24, 4  }
 0x259   : > { %s1327_s23 = smov %s1324_s17 }
 0x25a   :  { %24 = sbr.rel (!%p22_p0) target bundleno = 9 (0x9), region = 106 }
 0x25f   :  { %553 = vsyncpa [#allocation3], 1 }
 0x260   :  { %555 = vsyncpa [#allocation3 + $0x1], 1 }
 0x261   :  { %556 = vsyncpa [#allocation6], 1 }
 0x262   :  { %558 = vsyncpa [#allocation6 + $0x1], 1 }
 0x263   :  { %559 = vsyncpa [#allocation4], 1 }
 0x264   :  { %561 = vsyncpa [#allocation4 + $0x1], 1 }

// kernel: tpu_custom_call.1
= control target key start
LH: loop header
LB: loop body
LE: loop exit
PB: predicated region body
PF: predicated region fallthrough
CT: control target
= control target key end

     0   :  { %s1293_s0 = inlined_call_operand.hbm [shape: f32[18,128], index: 0, kind: input, shape index: {}]   ;;  %s1294_s1 = inlined_call_operand.hbm [shape: f32[18,128], index: 1, kind: input, shape index: {}]   ;;  %s1295_s2 = inlined_call_operand.hbm [shape: bf16[128,128], index: 2, kind: input, shape index: {}]   ;;  %s1296_s3 = inlined_call_operand.vmem [shape: f32[1,128], index: 3, kind: input, shape index: {}]   ;;  %s1297_s4 = inlined_call_operand.vmem [shape: f32[1,128], index: 4, kind: input, shape index: {}]   ;;  %s1298_s5 = inlined_call_operand.vmem [shape: f32[1,128], index: 5, kind: input, shape index: {}]   ;;  %s1299_s6 = inlined_call_operand.hbm [shape: f32[18,128], index: 6, kind: output, shape index: {}]  }
   0x1   :  { %1305 = sst [smem:[#allocation15_spill]] %s1295_s2 }
   0x2   :  { %11 = vsyncpa [#allocation3], 0 }
   0x3   :  { %13 = vsyncpa [#allocation3 + $0x1], 0 }
   0x4   :  { %14 = vsyncpa [#allocation6], 0 }
   0x5   :  { %16 = vsyncpa [#allocation6 + $0x1], 0 }
   0x6   :  { %17 = vsyncpa [#allocation4], 0 }
   0x7   :  { %19 = vsyncpa [#allocation4 + $0x1], 0  ;;  %s1024_s21 = smov 0   ;;  %s1026_s22 = smov 0  }
   0x8   :  { %s1028_s23 = smov 0   ;;  %s1030_s24 = smov 0  }
   0x9 LB: > { %s1045_s25 = sadd.s32 4294967295, %s974_s24   ;;  %s637_s26 = sadd.s32 4294967294, %s974_s24   ;;  %s974_s24 = sphi %s1030_s24, %s1323_s24   ;;  %s970_s23 = sphi %s1028_s23, %s1327_s23   ;;  %s966_s22 = sphi %s1026_s22, %s1326_s22   ;;  %s962_s21 = sphi %s1024_s21, %s1325_s21  }
   0xa   : > { %s1049_s27 = sadd.s32 1, %s974_s24   ;;  %s32_s28 = sadd.s32 1, %s970_s23 }
   0xb   : > { %1306 = sst [smem:[#allocation13_spill]] %s1049_s27  ;;  %s29_s29 = ssub.s32 %s974_s24, %s1049_s27 }
   0xc   : > { %p39_p0 = scmp.ne.s32.totalorder %s970_s23, %s966_s22  ;;  %p30_p1 = scmp.eq.s32.totalorder %s29_s29, 0 }
   0xd   : > { %p40_p2 = scmp.eq.s32.totalorder %s974_s24, 0  ;;  %p45_p3 = scmp.ne.s32.totalorder %s966_s22, %s962_s21 }
   0xe   : > { %p1304_p4 = scmp.eq.s32.totalorder %s1045_s25, 0  ;;  %p179_p7 = scmp.eq.s32.totalorder %s1045_s25, 1 }
   0xf   : > { %s1061_s30 = scalar_select %p30_p1, %s970_s23, %s32_s28  }
  0x10   : > { %p1063_p5 = por %p40_p2, %p39_p0  ;;  %p1069_p6 = por %p1304_p4, %p45_p3 }
  0x11   : > { %1307 = sst [smem:[#allocation14_spill]] %s1061_s30  ;;  %p185_p8 = scmp.eq.s32.totalorder %s637_s26, 1 }
  0x12   : > { %p638_p9 = scmp.ge.s32.totalorder %s974_s24, 1  ;;  %p192_p10 = scmp.lt.s32.totalorder %s974_s24, 3 }
  0x13   : > { %p1076_p11 = por %p179_p7, %p39_p0  ;;  %p1080_p12 = por %p185_p8, %p45_p3 }
  0x14   : > { %p1084_p13 = pnand %p638_p9, %p192_p10  ;;  %s1313_s2 = sld [smem:[#allocation15_spill]] }
  0x15   : > { %s1310_s9 = scalar_select %p1076_p11, 1, 0 }
  0x16   : > { %s1311_s10 = scalar_select %p1080_p12, 1, 0 }
  0x17   : > { %p719_p1 = pneg %p1084_p13  ;;  %s976_s15 = smov [#allocation7]  }
  0x18   : > { %s205_s16 = sshll.u32 %s976_s15, 4  ;;  %s977_s17 = smov 64   ;;  %s206_s16 = int_to_ptr.vmem [resolvable:$true] %s205_s16 }
  0x19   : > { %p720_p0 = pnand %p719_p1, %p1304_p4  ;;  %s978_s18 = smov 4  }
  0x1a   : > { %s203_s14 = sshll.u32 %s1313_s2, 4  ;;  %p1300_p2 = scmp.ge.s32.totalorder %s974_s24, 2  ;;  %s204_s14 = int_to_ptr.hbm [resolvable:$true] %s203_s14 }
  0x1b   : > { %722 = dma.hbm_to_vmem [thread:$0]  (!%p720_p0), %s204_s14, 1024, %s206_s16, [#allocation6], %s977_s17, %s977_s17, %s978_s18  }
  0x1c   : > { %224 = sbr.rel (%p1300_p2) target bundleno = 106 (0x6a), region = 32 }
  0x21   : > { %227 = sbr.rel (!%p1063_p5) target bundleno = 70 (0x46), region = 36  ;;  %s228_s19 = sand.u32 (%p1063_p5), 1, %s970_s23  }
  0x22   : > { %s642_s20 = sshll.u32 (%p1063_p5), %s974_s24, 1  ;;  %s641_s26 = sshll.u32 (%p1063_p5), %s228_s19, 4 }
  0x23   : > { %s234_s28 = ssub.s32 (%p1063_p5), 3, %s642_s20  ;;  %s1105_s14 = scalar_lea.sflag (%p1063_p5), [#allocation3], %s228_s19 }
  0x24   : > { %p235_p3 = scmp.lt.s32.totalorder (%p1063_p5), %s234_s28, 2  ;;  %s232_s15 = scalar_lea.vmem (%p1063_p5), [#allocation2], %s641_s26 }
  0x26   : > { %s1329_s28 = smov (!%p235_p3, %s234_s28), 2 }
  0x27   : > { %s643_s29 = sshll.u32 %s1329_s28, 3 }
  0x28   : > { %s238_s12 = ssub.s32 16, %s643_s29 }
  0x29   : > { %s239_s13 = sshll.u32 %s238_s12, 4 }
  0x2a   : > { %240 = vsyncadd %s1105_s14, %s239_s13  ;;  %p1108_p7 = scmp.ne.s32.totalorder %s643_s29, 0  ;;  %s701_s17 = sshll.u32 %s974_s24, 4 }
  0x2b   : > { %s243_s2 = scalar_lea.hbm %s1293_s0, %s701_s17  ;;  %s1116_s30 = sshll.u32 %s232_s15, 4  ;;  %s248_s30 = int_to_ptr.vmem [resolvable:$true] %s1116_s30 }
  0x2c   : > { %s245_s19 = sshll.u32 %s243_s2, 4  ;;  %s1301_s26 = sshll.u32 %s1329_s28, 7  ;;  %s1119_s19 = int_to_ptr.hbm [resolvable:$true] %s245_s19 }
  0x2d   : > { %s811_s12 = sshra.s32 %s1119_s19, 4  ;;  %s813_s29 = sshrl.u32 %s1301_s26, 4  ;;  %s812_s12 = int_to_ptr.hbm [resolvable:$true] %s811_s12 }
  0x2e   : > { %s818_s13 = scalar_lea.hbm %s812_s12, %s813_s29  ;;  %s822_s15 = scalar_lea.hbm %s1293_s0, 24 }
  0x2f   : > { %p819_p8 = scmp.ne.s32.totalorder %s812_s12, %s818_s13  ;;  %p823_p1 = scmp.lt.s32.totalorder %s812_s12, %s1293_s0 }
  0x30   : > { %p824_p0 = scmp.lt.s32.totalorder %s822_s15, %s818_s13 }
  0x31   : > { %p820_p9 = pnand %p819_p8, %p1108_p7 }
  0x32   : > { %p825_p3 = por %p824_p0, %p823_p1 }
  0x33   : > { %p821_p10 = pneg %p820_p9 }
  0x35   : > { %p826_p2 = pnand %p825_p3, %p821_p10 }
  0x37   : > { %829 = shalt.err (!%p826_p2)
}
  0x38   : > { %s830_s26 = sshra.s32 %s248_s30, 4  ;;  %s979_s18 = smov [#allocation2]   ;;  %s831_s26 = int_to_ptr.vmem [resolvable:$true] %s830_s26 }
  0x39   : > { %s837_s27 = scalar_lea.vmem %s831_s26, %s813_s29  ;;  %s841_s17 = scalar_lea.vmem %s979_s18, 32 }
  0x3a   : > { %p838_p8 = scmp.ne.s32.totalorder %s831_s26, %s837_s27  ;;  %p843_p12 = scmp.lt.s32.totalorder %s841_s17, %s837_s27 }
  0x3c   : > { %p839_p9 = pnand %p838_p8, %p1108_p7 }
  0x3e   : > { %p840_p4 = pneg %p839_p9 }
  0x40   : > { %p845_p11 = pnand %p843_p12, %p840_p4 }
  0x42   : > { %848 = shalt.err (!%p845_p11)
}
  0x43   : > { %s980_s12 = smov 128   ;;  %s981_s13 = smov 8  }
  0x44   : > { %s1315_s15 = sshll.u32 %s1329_s28, 7 }
  0x45   : > { %253 = dma.hbm_to_vmem [thread:$0]  (%p1108_p7), %s1119_s19, %s1315_s15, %s248_s30, %s1105_s14, %s980_s12, %s980_s12, %s981_s13  }
  0x46 PF: > { %256 = sbr.rel (!%p1063_p5) target bundleno = 106 (0x6a), region = 40  ;;  %s257_s27 = sand.u32 (%p1063_p5), 1, %s974_s24  }
  0x47   : > { %s259_s26 = sand.u32 (%p1063_p5), 1, %s970_s23   ;;  %s649_s20 = sshll.u32 (%p1063_p5), %s974_s24, 1 }
  0x48   : > { %s648_s29 = sshll.u32 (%p1063_p5), %s259_s26, 4  ;;  %s263_s2 = ssub.s32 (%p1063_p5), 3, %s649_s20 }
  0x49   : > { %p264_p4 = scmp.lt.s32.totalorder (%p1063_p5), %s263_s2, 2  ;;  %s1153_s30 = scalar_lea.sflag (%p1063_p5), [#allocation6], %s257_s27 }
  0x4a   : > { %s261_s7 = scalar_lea.vmem (%p1063_p5), [#allocation5], %s648_s29 }
  0x4b   : > { %s1331_s2 = smov (!%p264_p4, %s263_s2), 2 }
  0x4c   : > { %s650_s16 = sshll.u32 %s1331_s2, 3 }
  0x4d   : > { %s267_s18 = ssub.s32 16, %s650_s16 }
  0x4e   : > { %s268_s28 = sshll.u32 %s267_s18, 4 }
  0x4f   : > { %269 = vsyncadd %s1153_s30, %s268_s28  ;;  %p1156_p5 = scmp.ne.s32.totalorder %s650_s16, 0  ;;  %s702_s19 = sshll.u32 %s974_s24, 4 }
  0x50   : > { %s272_s13 = scalar_lea.hbm %s1294_s1, %s702_s19  ;;  %s1164_s15 = sshll.u32 %s261_s7, 4  ;;  %s277_s15 = int_to_ptr.vmem [resolvable:$true] %s1164_s15 }
  0x51   : > { %s274_s27 = sshll.u32 %s272_s13, 4  ;;  %s654_s26 = sshll.u32 %s1331_s2, 7  ;;  %s1167_s27 = int_to_ptr.hbm [resolvable:$true] %s274_s27 }
  0x52   : > { %s850_s29 = sshra.s32 %s1167_s27, 4  ;;  %s852_s20 = sshrl.u32 %s654_s26, 4  ;;  %s851_s29 = int_to_ptr.hbm [resolvable:$true] %s850_s29 }
  0x53   : > { %s857_s16 = scalar_lea.hbm %s851_s29, %s852_s20  ;;  %s861_s7 = scalar_lea.hbm %s1294_s1, 24 }
  0x54   : > { %p858_p11 = scmp.ne.s32.totalorder %s851_s29, %s857_s16  ;;  %p862_p7 = scmp.lt.s32.totalorder %s851_s29, %s1294_s1 }
  0x55   : > { %p863_p10 = scmp.lt.s32.totalorder %s861_s7, %s857_s16 }
  0x56   : > { %p859_p12 = pnand %p858_p11, %p1156_p5 }
  0x57   : > { %p864_p1 = por %p863_p10, %p862_p7 }
  0x58   : > { %p860_p2 = pneg %p859_p12 }
  0x5a   : > { %p865_p0 = pnand %p864_p1, %p860_p2 }
  0x5c   : > { %868 = shalt.err (!%p865_p0)
}
  0x5d   : > { %s869_s12 = sshra.s32 %s277_s15, 4  ;;  %s982_s18 = smov [#allocation5]   ;;  %s870_s12 = int_to_ptr.vmem [resolvable:$true] %s869_s12 }
  0x5e   : > { %s876_s13 = scalar_lea.vmem %s870_s12, %s852_s20  ;;  %s880_s28 = scalar_lea.vmem %s982_s18, 32 }
  0x5f   : > { %p877_p3 = scmp.ne.s32.totalorder %s870_s12, %s876_s13  ;;  %p882_p4 = scmp.lt.s32.totalorder %s880_s28, %s876_s13 }
  0x61   : > { %p878_p8 = pnand %p877_p3, %p1156_p5 }
  0x63   : > { %p879_p9 = pneg %p878_p8 }
  0x65   : > { %p884_p11 = pnand %p882_p4, %p879_p9 }
  0x67   : > { %887 = shalt.err (!%p884_p11)
}
  0x68   : > { %s983_s29 = smov 128   ;;  %s984_s16 = smov 8  }
  0x69   : > { %282 = dma.hbm_to_vmem [thread:$0]  (%p1156_p5), %s1167_s27, %s654_s26, %s277_s15, %s1153_s30, %s983_s29, %s983_s29, %s984_s16  }
  0x6a PF: > { %288 = sbr.rel (%p1084_p13) target bundleno = 586 (0x24a), region = 44  ;;  %s1196_s20 = sand.u32 (!%p1084_p13), 1, %s966_s22  }
  0x6b   : > { %s1199_s7 = sshll.u32 (!%p1084_p13), %s1196_s20, 4  ;;  %s291_s19 = scalar_lea.sflag (!%p1084_p13), [#allocation3], %s1196_s20 }
  0x6c   : > { %s294_s17 = scalar_lea.vmem (!%p1084_p13), [#allocation2], %s1199_s7 }
  0x6f   : > { %945 = dma.done.wait (%p1069_p6), %s291_s19, 256  }
  0x70   : > { %947 = vsyncadd (%p1069_p6), %s291_s19, 4294967040  ;;  %s300_s11 = sand.u32 1, %s1045_s25   ;;  %s304_s30 = scalar_lea.vmem [#allocation5], %s1199_s7 }
  0x71   : > { %s301_s2 = scalar_lea.sflag [#allocation6], %s300_s11 }
  0x72   : > { %949 = dma.done.wait (%p1069_p6), %s301_s2, 256  }
  0x73   : > { %951 = vsyncadd (%p1069_p6), %s301_s2, 4294967040  ;;  %p1317_p13 = scmp.eq.s32.totalorder %s1045_s25, 0 }
  0x75   : > { %953 = dma.done.wait (%p1317_p13), [#allocation6], 1024   ;;  %p1318_p5 = pmov %p1317_p13 }
  0x76   : > { %v710_v0 = vld [vmem:[#allocation7 + $0x38] sm:$0xff]  ;;  %v709_v1 = vld [vmem:[#allocation7 + $0x30] sm:$0xff]  ;;  %v708_v2 = vld [vmem:[#allocation7 + $0x28] sm:$0xff]  ;;  %v985_v20 = vmov 128.0   ;;  %s343_s13 = scalar_lea.vmem [#allocation8], %s1199_s7  ;;  %s510_s18 = scalar_lea.sflag [#allocation4], %s1196_s20 }
  0x77   : > { %955 = vsyncadd (%p1318_p5), [#allocation6], 4294966272  ;;  %430 = vmatpush.bf16.msra.mxu0 %v710_v0  ;;  %v707_v3 = vld [vmem:[#allocation7 + $0x20] sm:$0xff]  ;;  %v706_v4 = vld [vmem:[#allocation7 + $0x18] sm:$0xff]  ;;  %775 = vrcp.f32 %v985_v20  ;;  %p1319_p6 = scmp.ne.s32.totalorder %s1310_s9, 0 }
  0x78   : > { %v705_v5 = vld [vmem:[#allocation7 + $0x10] sm:$0xff]  ;;  %v704_v6 = vld [vmem:[#allocation7 + $0x8] sm:$0xff]  ;;  %v703_v7 = vld [vmem:[#allocation7] sm:$0xff]  ;;  %s693_s28 = sshll.u32 (%p1319_p6), %s1045_s25, 1 }
  0x79   : > { %v359_v8 = vld [vmem:[%s294_s17] sm:$0xff]  ;;  %v360_v9 = vld [vmem:[%s294_s17 + $0x8] sm:$0xff]  ;;  %s518_s29 = ssub.s32 (%p1319_p6), 3, %s693_s28 }
  0x7a   : > { %v361_v10 = vpack.c.bf16 %v360_v9, %v359_v8  ;;  %v772_v11 = vld [vmem:[%s1296_s3] ss:$0 sm:$0xff]  ;;  %v445_v17 = vld [vmem:[%s304_s30 + $0x8] sm:$0xff]  ;;  %p519_p12 = scmp.lt.s32.totalorder (%p1319_p6), %s518_s29, 2 }
  0x7b   : > { %431 = vmatpush.bf16.msra.mxu0 %v709_v1  ;;  %v444_v13 = vld [vmem:[%s304_s30] sm:$0xff] }
  0x7c   : > { %v773_v49 = vld [vmem:[%s1297_s4] ss:$0 sm:$0xff] }
  0x7d   : > { %v776_v21 = vpop.eup %775  ;;  %v774_v52 = vld [vmem:[%s1298_s5] ss:$0 sm:$0xff] }
  0x7e   : > { %v453_v22 = vmul.f32 128.0, %v776_v21  ;;  %vm457_vm0 = vweird.f32 %v776_v21 }
  0x7f   : > { %432 = vmatpush.bf16.msra.mxu0 %v708_v2 }
  0x80   : > { %v454_v23 = vsub.f32 1.0, %v453_v22 }
  0x82   : > { %v455_v24 = vmul.f32 %v776_v21, %v454_v23 }
  0x83   : > { %433 = vmatpush.bf16.msra.mxu0 %v707_v3 }
  0x84   : > { %v456_v25 = vadd.f32 %v776_v21, %v455_v24 }
  0x86   : > { %v458_v26 = vsel %vm457_vm0, %v776_v21, %v456_v25 }
  0x87   : > { %434 = vmatpush.bf16.msra.mxu0 %v706_v4 }
  0x8b   : > { %435 = vmatpush.bf16.msra.mxu0 %v705_v5 }
  0x8f   : > { %436 = vmatpush.bf16.msra.mxu0 %v704_v6 }
  0x93   : > { %437 = vmatpush.bf16.msra.mxu0 %v703_v7 }
  0x96   : > { %438 = vmatmul.bf16.vlgmr.msra.gmra.mxu0 %v361_v10 }
 0x113   : > { %v439_v12 = vpop.f32.mrf.mxu0 }
 0x114   : > { %v440_v14 = vadd.f32 %v772_v11, %v439_v12 }
 0x116   : > { %v446_v15 = vadd.f32 %v444_v13, %v440_v14 }
 0x118   : > { %448 = vadd.xlane.f32.xlu0 %v446_v15 }
 0x11b   : > { %v441_v16 = vpop.f32.mrf.mxu0 }
 0x11c   : > { %v442_v18 = vadd.f32 %v772_v11, %v441_v16 }
 0x11e   : > { %v447_v19 = vadd.f32 %v445_v17, %v442_v18 }
 0x120   : > { %450 = vadd.xlane.f32.xlu0 %v447_v19 }
 0x18b   : > { %v449_v27 = vpop.xlane.xlu0 %448 }
 0x18c   : > { %v459_v28 = vmul.f32 %v458_v26, %v449_v27 }
 0x18e   : > { %v461_v29 = vsub.f32 %v446_v15, %v459_v28 }
 0x190   : > { %v463_v30 = vmul.f32 %v461_v29, %v461_v29 }
 0x192   : > { %465 = vadd.xlane.f32.xlu1 %v463_v30 }
 0x193   : > { %v451_v31 = vpop.xlane.xlu0 %450 }
 0x194   : > { %v460_v32 = vmul.f32 %v458_v26, %v451_v31 }
 0x196   : > { %v462_v33 = vsub.f32 %v447_v19, %v460_v32 }
 0x198   : > { %v464_v34 = vmul.f32 %v462_v33, %v462_v33 }
 0x19a   : > { %467 = vadd.xlane.f32.xlu1 %v464_v34 }
 0x205   : > { %v466_v35 = vpop.xlane.xlu1 %465 }
 0x206   : > { %v469_v36 = vmul.f32 %v466_v35, %v458_v26 }
 0x208   : > { %v471_v37 = vadd.f32 1e-12, %v469_v36 }
 0x20a   : > { %777 = vrsqrt.f32 %v471_v37  ;;  %vm479_vm2 = vweird.f32 %v471_v37 }
 0x20d   : > { %v468_v38 = vpop.xlane.xlu1 %467 }
 0x20e   : > { %v470_v39 = vmul.f32 %v468_v38, %v458_v26 }
 0x210   : > { %v778_v40 = vpop.eup %777  ;;  %v472_v41 = vadd.f32 1e-12, %v470_v39 }
 0x211   : > { %v474_v42 = vmul.f32 %v778_v40, %v471_v37  ;;  %vm480_vm1 = vweird.f32 %v778_v40 }
 0x212   : > { %779 = vrsqrt.f32 %v472_v41  ;;  %vm481_vm3 = vmor %vm479_vm2, %vm480_vm1  ;;  %vm489_vm5 = vweird.f32 %v472_v41 }
 0x213   : > { %v475_v43 = vmul.f32 %v778_v40, %v474_v42 }
 0x215   : > { %v476_v44 = vmul.f32 0.5, %v475_v43 }
 0x217   : > { %v477_v45 = vsub.f32 1.5, %v476_v44 }
 0x218   : > { %v780_v46 = vpop.eup %779 }
 0x219   : > { %v478_v47 = vmul.f32 %v778_v40, %v477_v45  ;;  %v484_v48 = vmul.f32 %v780_v46, %v472_v41  ;;  %vm490_vm4 = vweird.f32 %v780_v46 }
 0x21a   : > { %vm491_vm6 = vmor %vm489_vm5, %vm490_vm4 }
 0x21b   : > { %v482_v50 = vsel %vm481_vm3, %v778_v40, %v478_v47  ;;  %v485_v51 = vmul.f32 %v780_v46, %v484_v48 }
 0x21c   : > { %v493_v53 = vmul.f32 %v482_v50, %v461_v29 }
 0x21d   : > { %v486_v54 = vmul.f32 0.5, %v485_v51 }
 0x21e   : > { %v499_v55 = vmul.f32 %v773_v49, %v493_v53 }
 0x21f   : > { %v487_v56 = vsub.f32 1.5, %v486_v54 }
 0x220   : > { %v505_v57 = vadd.f32 %v774_v52, %v499_v55 }
 0x221   : > { %v488_v58 = vmul.f32 %v780_v46, %v487_v56 }
 0x222   : > { %507 = vst [vmem:[%s343_s13] sm:$0xff] %v505_v57 }
 0x223   : > { %v492_v59 = vsel %vm491_vm6, %v780_v46, %v488_v58 }
 0x224   : > { %v494_v60 = vmul.f32 %v492_v59, %v462_v33 }
 0x226   : > { %v500_v61 = vmul.f32 %v773_v49, %v494_v60  ;;  %516 = sbr.rel (!%p1319_p6) target bundleno = 586 (0x24a), region = 60 }
 0x228   : > { %v506_v62 = vadd.f32 %v774_v52, %v500_v61 }
 0x22a   : > { %508 = vst [vmem:[%s343_s13 + $0x8] sm:$0xff] %v506_v62 }
 0x22b   : > { %s1333_s29 = smov (!%p519_p12, %s518_s29), 2 }
 0x22c   : > { %s694_s16 = sshll.u32 %s1333_s29, 3 }
 0x22d   : > { %s522_s7 = ssub.s32 16, %s694_s16 }
 0x22e   : > { %s523_s19 = sshll.u32 %s522_s7, 4 }
 0x22f   : > { %524 = vsyncadd %s510_s18, %s523_s19  ;;  %p1240_p2 = scmp.ne.s32.totalorder %s694_s16, 0  ;;  %s711_s9 = sshll.u32 %s1045_s25, 4 }
 0x230   : > { %s527_s30 = scalar_lea.hbm %s1299_s6, %s711_s9  ;;  %s529_s8 = sshll.u32 %s343_s13, 4  ;;  %s1248_s8 = int_to_ptr.vmem [resolvable:$true] %s529_s8 }
 0x231   : > { %s531_s14 = sshll.u32 %s527_s30, 4  ;;  %s698_s15 = sshll.u32 %s1333_s29, 7  ;;  %s1250_s14 = int_to_ptr.hbm [resolvable:$true] %s531_s14 }
 0x232   : > { %s889_s27 = sshra.s32 %s1248_s8, 4  ;;  %s891_s26 = sshrl.u32 %s698_s15, 4  ;;  %s890_s27 = int_to_ptr.vmem [resolvable:$true] %s889_s27 }
 0x233   : > { %s896_s12 = scalar_lea.vmem %s890_s27, %s891_s26  ;;  %s986_s25 = smov [#allocation8]  }
 0x234   : > { %p897_p7 = scmp.ne.s32.totalorder %s890_s27, %s896_s12  ;;  %s900_s28 = scalar_lea.vmem %s986_s25, 32 }
 0x235   : > { %p902_p0 = scmp.lt.s32.totalorder %s900_s28, %s896_s12 }
 0x236   : > { %p898_p10 = pnand %p897_p7, %p1240_p2 }
 0x238   : > { %p899_p1 = pneg %p898_p10 }
 0x23a   : > { %p904_p3 = pnand %p902_p0, %p899_p1 }
 0x23c   : > { %907 = shalt.err (!%p904_p3)
}
 0x23d   : > { %s908_s13 = sshra.s32 %s1250_s14, 4  ;;  %s919_s9 = scalar_lea.hbm %s1299_s6, 24  ;;  %s909_s13 = int_to_ptr.hbm [resolvable:$true] %s908_s13 }
 0x23e   : > { %s915_s16 = scalar_lea.hbm %s909_s13, %s891_s26  ;;  %p920_p11 = scmp.lt.s32.totalorder %s909_s13, %s1299_s6 }
 0x23f   : > { %p916_p8 = scmp.ne.s32.totalorder %s909_s13, %s915_s16  ;;  %p921_p13 = scmp.lt.s32.totalorder %s919_s9, %s915_s16 }
 0x241   : > { %p917_p9 = pnand %p916_p8, %p1240_p2  ;;  %p922_p5 = por %p921_p13, %p920_p11 }
 0x243   : > { %p918_p4 = pneg %p917_p9 }
 0x245   : > { %p923_p6 = pnand %p922_p5, %p918_p4 }
 0x247   : > { %926 = shalt.err (!%p923_p6)
}
 0x248   : > { %s987_s30 = smov 128   ;;  %s988_s27 = smov 8  }
 0x249   : > { %537 = dma.vmem_to_hbm [thread:$0]  (%p1240_p2), %s1248_s8, %s698_s15, %s1250_s14, %s510_s18, %s987_s30, %s987_s30, %s988_s27  }
 0x24a PF: > { %s546_s26 = sand.u32 1, %s962_s21   ;;  %p1321_p12 = scmp.ne.s32.totalorder %s1311_s10, 0 }
 0x24b   : > { %p1322_p7 = scmp.ge.s32.totalorder %s974_s24, 2  ;;  %s547_s12 = scalar_lea.sflag [#allocation4], %s546_s26 }
 0x24d   : > { %p724_p10 = pnand %p1322_p7, %p1321_p12 }
 0x24f   : > { %p725_p1 = pneg %p724_p10 }
 0x251   : > { %957 = dma.done.wait (%p725_p1), %s547_s12, 256  }
 0x252   : > { %959 = vsyncadd (%p725_p1), %s547_s12, 4294967040  ;;  %s1323_s24 = sld [smem:[#allocation13_spill]]  ;;  %s1325_s21 = smov %s966_s22 }
 0x253   : > { %s1324_s17 = sld [smem:[#allocation14_spill]]  ;;  %s1326_s22 = smov %s970_s23 }
 0x258   : > { %p22_p0 = scmp.ge.s32.totalorder %s1323_s24, 4  }
 0x259   : > { %s1327_s23 = smov %s1324_s17 }
 0x25a   :  { %24 = sbr.rel (!%p22_p0) target bundleno = 9 (0x9), region = 106 }
 0x25f   :  { %553 = vsyncpa [#allocation3], 1 }
 0x260   :  { %555 = vsyncpa [#allocation3 + $0x1], 1 }
 0x261   :  { %556 = vsyncpa [#allocation6], 1 }
 0x262   :  { %558 = vsyncpa [#allocation6 + $0x1], 1 }
 0x263   :  { %559 = vsyncpa [#allocation4], 1 }
 0x264   :  { %561 = vsyncpa [#allocation4 + $0x1], 1 }

</bundles_post_ra>
